<compile_context>
chip_gen: v6e
topology: v6e:2x2x1
jax: 0.10.0
libtpu: 0.0.40
codegen_flags: <defaults>
</compile_context>

<pallas_src>
import jax
import jax.numpy as jnp
from jax.experimental import pallas as pl
from jax.experimental.pallas import tpu as pltpu


_SMOOTH = 0.01
_MAX_TILE_N = 8192   # lanes per grid step: double-buffered input blocks stay far below the
                     # default scoped VMEM limit on every generation (incl. v7x's 64 MiB).
_OUT_LANES = 128     # lane-dense output block -> unmasked final stores.


def _round_up(x, m):
    return (x + m - 1) // m * m


def make_dice_kernel(class_ids, tile_n, n_valid, need_mask):
    """Kernel computing per-(batch, class) intersection / union sums (+smooth)."""
    class_ids = tuple(int(c) for c in class_ids)

    def kernel(x_ref, t_ref, inter_ref, union_ref, inter_acc, union_acc):
        n = pl.program_id(1)

        @pl.when(n == 0)
        def _init():
            inter_acc[...] = jnp.zeros_like(inter_acc)
            union_acc[...] = jnp.zeros_like(union_acc)

        # --- gather the K selected class rows via static ref slices (free views) ------
        rows = [x_ref[0, cid:cid + 1, :] for cid in class_ids]        # each (1, TILE_N) f32
        xk = jnp.concatenate(rows, axis=0)                            # (K, TILE_N)

        # --- softmax over the selected-class (sublane) axis; one reciprocal per pixel --
        m = jnp.max(xk, axis=0, keepdims=True)                        # (1, TILE_N)
        e = jnp.exp(xk - m)                                           # (K, TILE_N)
        denom = jnp.sum(e, axis=0, keepdims=True)                     # (1, TILE_N)
        # approx=False keeps exact numerics; approx=True is a further (minor) EUP win.
        p = e * pl.reciprocal(denom, approx=False)                    # (K, TILE_N)

        # --- vectorized one-hot of the selected classes (no per-class slices of p) -----
        t = t_ref[0]                                                  # (1, TILE_N) int32
        oh = jnp.concatenate(
            [(t == cid).astype(jnp.float32) for cid in class_ids], axis=0)  # (K, TILE_N)

        if need_mask:
            # Spatial padding: remove padded lanes' softmax mass (padded labels are -1,
            # so oh is already zero there).
            idx = jax.lax.broadcasted_iota(jnp.int32, (1, tile_n), 1)
            valid = ((n * tile_n + idx) < n_valid).astype(jnp.float32)
            p = p * valid

        # --- per-class partial sums, accumulated full-width in VMEM scratch ------------
        inter_acc[...] += jnp.sum(p * oh, axis=1, keepdims=True)      # (K, 128) += (K, 1)
        union_acc[...] += jnp.sum(p + oh, axis=1, keepdims=True)      # sum(p)+sum(oh)

        @pl.when(n == pl.num_programs(1) - 1)
        def _finish():
            inter_ref[0] = inter_acc[...] + _SMOOTH                   # lane-dense stores
            union_ref[0] = union_acc[...] + _SMOOTH

    return kernel


def custom_soft_dice_loss(logits, target, n_classes, class_ids):
    """JAX wrapper: free reshapes + tiled Pallas hot path + tiny scalar tail."""
    B, C, H, W = logits.shape
    K = len(class_ids)
    N = H * W

    tile_n = min(_MAX_TILE_N, _round_up(N, 128))
    n_pad = _round_up(N, tile_n)
    num_tiles = n_pad // tile_n
    need_mask = n_pad != N

    # Free reshapes only: no class gather / jnp.take in the wrapper.
    x = logits.reshape(B, C, N).astype(jnp.float32)
    t = target.reshape(B, 1, N).astype(jnp.int32)
    if need_mask:
        x = jnp.pad(x, ((0, 0), (0, 0), (0, n_pad - N)))
        t = jnp.pad(t, ((0, 0), (0, 0), (0, n_pad - N)), constant_values=-1)
    # TODO(synk): optionally ship labels as int8 (and logits as bf16 on v5e/v6e) to cut
    # HBM bytes further once narrow-dtype (1, TILE_N) label blocks are validated.

    kernel = make_dice_kernel(class_ids, tile_n, N, need_mask)

    inter, union = pl.pallas_call(
        kernel,
        grid=(B, num_tiles),
        in_specs=[
            pl.BlockSpec((1, C, tile_n), lambda b, n: (b, 0, n)),
            pl.BlockSpec((1, 1, tile_n), lambda b, n: (b, 0, n)),
        ],
        out_specs=(
            pl.BlockSpec((1, K, _OUT_LANES), lambda b, n: (b, 0, 0)),
            pl.BlockSpec((1, K, _OUT_LANES), lambda b, n: (b, 0, 0)),
        ),
        out_shape=(
            jax.ShapeDtypeStruct((B, K, _OUT_LANES), jnp.float32),
            jax.ShapeDtypeStruct((B, K, _OUT_LANES), jnp.float32),
        ),
        scratch_shapes=[
            pltpu.VMEM((K, _OUT_LANES), jnp.float32),
            pltpu.VMEM((K, _OUT_LANES), jnp.float32),
        ],
        compiler_params=pltpu.CompilerParams(
            dimension_semantics=("parallel", "arbitrary")),
    )(x, t)

    inter = inter[:, :, 0]                                            # (B, K), smooth included
    union = union[:, :, 0]
    score = jnp.sum(2.0 * inter / union)
    return 1.0 - score / (float(B) * float(n_classes))


def reference_loss(logits, target, n_classes, class_ids):
    """Pure-JAX reference mirroring the PyTorch forward exactly."""
    B = logits.shape[0]
    K = len(class_ids)
    idx = jnp.asarray(class_ids, dtype=jnp.int32)
    x = jnp.take(logits, idx, axis=1)
    p = jax.nn.softmax(x.astype(jnp.float32), axis=1).reshape(B, K, -1)
    labels = target.reshape(B, -1).astype(jnp.int32)
    oh = jax.nn.one_hot(labels, n_classes, axis=1, dtype=jnp.float32)  # (B, n_classes, N)
    tgt = jnp.take(oh, idx, axis=1)                                    # (B, K, N)
    inter = jnp.sum(p * tgt, axis=2) + _SMOOTH
    union = jnp.sum(p, axis=2) + jnp.sum(tgt, axis=2) + _SMOOTH
    score = jnp.sum(2.0 * inter / union)
    return 1.0 - score / (float(B) * float(n_classes))


if __name__ == "__main__":
    B, C, H, W = 2, 4, 16, 16
    n_classes = 4
    class_ids = (1, 2, 3)

    key = jax.random.PRNGKey(0)
    k_logits, k_target = jax.random.split(key)
    logits = jax.random.normal(k_logits, (B, C, H, W), dtype=jnp.float32)
    target = jax.random.randint(k_target, (B, 1, H, W), 0, n_classes, dtype=jnp.int32)

    loss = jax.block_until_ready(
        custom_soft_dice_loss(logits, target, n_classes, class_ids))
    ref = jax.block_until_ready(
        reference_loss(logits, target, n_classes, class_ids))
    assert abs(float(loss) - float(ref)) < 1e-4, (float(loss), float(ref))

    print("KERNEL_OK")
</pallas_src>

<mosaic_0001>
module attributes {stable_mosaic.version = 11 : i64} {
  func.func @kernel(%arg0: i32, %arg1: i32, %arg2: memref<1x4x256xf32, #tpu.memory_space<vmem>>, %arg3: memref<1x1x256xi32, #tpu.memory_space<vmem>>, %arg4: memref<1x3x128xf32, #tpu.memory_space<vmem>>, %arg5: memref<1x3x128xf32, #tpu.memory_space<vmem>>, %arg6: memref<3x128xf32, #tpu.memory_space<vmem>>, %arg7: memref<3x128xf32, #tpu.memory_space<vmem>>) attributes {dimension_semantics = [#tpu.dimension_semantics<parallel>, #tpu.dimension_semantics<arbitrary>], iteration_bounds = array<i64: 2, 1>, scalar_prefetch = 0 : i64, scratch_operands = 2 : i64, tpu.core_type = #tpu.core_type<tc>, window_params = [{transform_indices = @transform_0, window_bounds = array<i64: 1, 4, 256>}, {transform_indices = @transform_1, window_bounds = array<i64: 1, 1, 256>}, {transform_indices = @transform_2, window_bounds = array<i64: 1, 3, 128>}, {transform_indices = @transform_3, window_bounds = array<i64: 1, 3, 128>}]} {
    %c0_i32 = arith.constant 0 : i32
    %0 = arith.cmpi eq, %arg1, %c0_i32 : i32
    %1 = arith.extui %0 : i1 to i32
    %c0_i32_0 = arith.constant 0 : i32
    %2 = arith.cmpi ne, %1, %c0_i32_0 : i32
    scf.if %2 {
      %cst_22 = arith.constant 0.000000e+00 : f32
      %52 = vector.broadcast %cst_22 : f32 to vector<3x128xf32>
      %c0_23 = arith.constant 0 : index
      %c0_24 = arith.constant 0 : index
      %53 = vector.load %arg6[%c0_23, %c0_24] : memref<3x128xf32, #tpu.memory_space<vmem>>, vector<3x128xf32>
      tpu.vector_store %arg6[%c0_23, %c0_24], %52 {strides = array<i32>} : memref<3x128xf32, #tpu.memory_space<vmem>>, vector<3x128xf32>,
      %cst_25 = arith.constant 0.000000e+00 : f32
      %54 = vector.broadcast %cst_25 : f32 to vector<3x128xf32>
      %c0_26 = arith.constant 0 : index
      %c0_27 = arith.constant 0 : index
      %55 = vector.load %arg7[%c0_26, %c0_27] : memref<3x128xf32, #tpu.memory_space<vmem>>, vector<3x128xf32>
      tpu.vector_store %arg7[%c0_26, %c0_27], %54 {strides = array<i32>} : memref<3x128xf32, #tpu.memory_space<vmem>>, vector<3x128xf32>,
    } else {
    }
    %c0 = arith.constant 0 : index
    %c1 = arith.constant 1 : index
    %c0_1 = arith.constant 0 : index
    %3 = vector.load %arg2[%c0, %c1, %c0_1] : memref<1x4x256xf32, #tpu.memory_space<vmem>>, vector<1x1x256xf32>
    %4 = vector.shape_cast %3 : vector<1x1x256xf32> to vector<1x256xf32>
    %c0_2 = arith.constant 0 : index
    %c2 = arith.constant 2 : index
    %c0_3 = arith.constant 0 : index
    %5 = vector.load %arg2[%c0_2, %c2, %c0_3] : memref<1x4x256xf32, #tpu.memory_space<vmem>>, vector<1x1x256xf32>
    %6 = vector.shape_cast %5 : vector<1x1x256xf32> to vector<1x256xf32>
    %c0_4 = arith.constant 0 : index
    %c3 = arith.constant 3 : index
    %c0_5 = arith.constant 0 : index
    %7 = vector.load %arg2[%c0_4, %c3, %c0_5] : memref<1x4x256xf32, #tpu.memory_space<vmem>>, vector<1x1x256xf32>
    %8 = vector.shape_cast %7 : vector<1x1x256xf32> to vector<1x256xf32>
    %9 = tpu.concatenate %4, %6, %8 in 0 : vector<1x256xf32>, vector<1x256xf32>, vector<1x256xf32> -> vector<3x256xf32>
    %cst = arith.constant dense<0xFF800000> : vector<256xf32>
    %10 = vector.multi_reduction <maximumf>, %9, %cst [0] : vector<3x256xf32> to vector<256xf32>
    %11 = vector.shape_cast %10 : vector<256xf32> to vector<1x256xf32>
    %12 = vector.broadcast %11 : vector<1x256xf32> to vector<3x256xf32>
    %13 = arith.subf %9, %12 : vector<3x256xf32>
    %14 = math.exp %13 : vector<3x256xf32>
    %cst_6 = arith.constant dense<0.000000e+00> : vector<256xf32>
    %15 = vector.multi_reduction <add>, %14, %cst_6 [0] : vector<3x256xf32> to vector<256xf32>
    %16 = vector.shape_cast %15 : vector<256xf32> to vector<1x256xf32>
    %17 = tpu.reciprocal %16 : vector<1x256xf32> -> vector<1x256xf32>
    %18 = vector.broadcast %17 : vector<1x256xf32> to vector<3x256xf32>
    %19 = arith.mulf %14, %18 : vector<3x256xf32>
    %c0_7 = arith.constant 0 : index
    %c0_8 = arith.constant 0 : index
    %c0_9 = arith.constant 0 : index
    %20 = vector.load %arg3[%c0_7, %c0_8, %c0_9] : memref<1x1x256xi32, #tpu.memory_space<vmem>>, vector<1x1x256xi32>
    %21 = vector.shape_cast %20 : vector<1x1x256xi32> to vector<1x256xi32>
    %c1_i32 = arith.constant 1 : i32
    %22 = vector.broadcast %c1_i32 : i32 to vector<1x256xi32>
    %23 = arith.cmpi eq, %21, %22 : vector<1x256xi32>
    %24 = arith.extui %23 : vector<1x256xi1> to vector<1x256xi32>
    %25 = arith.sitofp %24 : vector<1x256xi32> to vector<1x256xf32>
    %c2_i32 = arith.constant 2 : i32
    %26 = vector.broadcast %c2_i32 : i32 to vector<1x256xi32>
    %27 = arith.cmpi eq, %21, %26 : vector<1x256xi32>
    %28 = arith.extui %27 : vector<1x256xi1> to vector<1x256xi32>
    %29 = arith.sitofp %28 : vector<1x256xi32> to vector<1x256xf32>
    %c3_i32 = arith.constant 3 : i32
    %30 = vector.broadcast %c3_i32 : i32 to vector<1x256xi32>
    %31 = arith.cmpi eq, %21, %30 : vector<1x256xi32>
    %32 = arith.extui %31 : vector<1x256xi1> to vector<1x256xi32>
    %33 = arith.sitofp %32 : vector<1x256xi32> to vector<1x256xf32>
    %34 = tpu.concatenate %25, %29, %33 in 0 : vector<1x256xf32>, vector<1x256xf32>, vector<1x256xf32> -> vector<3x256xf32>
    %c0_10 = arith.constant 0 : index
    %c0_11 = arith.constant 0 : index
    %35 = vector.load %arg6[%c0_10, %c0_11] : memref<3x128xf32, #tpu.memory_space<vmem>>, vector<3x128xf32>
    %36 = arith.mulf %19, %34 : vector<3x256xf32>
    %cst_12 = arith.constant dense<0.000000e+00> : vector<3xf32>
    %37 = vector.multi_reduction <add>, %36, %cst_12 [1] : vector<3x256xf32> to vector<3xf32>
    %38 = vector.shape_cast %37 : vector<3xf32> to vector<3x1xf32>
    %39 = vector.broadcast %38 : vector<3x1xf32> to vector<3x128xf32>
    %40 = arith.addf %35, %39 : vector<3x128xf32>
    %c0_13 = arith.constant 0 : index
    %c0_14 = arith.constant 0 : index
    %41 = vector.load %arg6[%c0_13, %c0_14] : memref<3x128xf32, #tpu.memory_space<vmem>>, vector<3x128xf32>
    tpu.vector_store %arg6[%c0_13, %c0_14], %40 {strides = array<i32>} : memref<3x128xf32, #tpu.memory_space<vmem>>, vector<3x128xf32>,
    %c0_15 = arith.constant 0 : index
    %c0_16 = arith.constant 0 : index
    %42 = vector.load %arg7[%c0_15, %c0_16] : memref<3x128xf32, #tpu.memory_space<vmem>>, vector<3x128xf32>
    %43 = arith.addf %19, %34 : vector<3x256xf32>
    %cst_17 = arith.constant dense<0.000000e+00> : vector<3xf32>
    %44 = vector.multi_reduction <add>, %43, %cst_17 [1] : vector<3x256xf32> to vector<3xf32>
    %45 = vector.shape_cast %44 : vector<3xf32> to vector<3x1xf32>
    %46 = vector.broadcast %45 : vector<3x1xf32> to vector<3x128xf32>
    %47 = arith.addf %42, %46 : vector<3x128xf32>
    %c0_18 = arith.constant 0 : index
    %c0_19 = arith.constant 0 : index
    %48 = vector.load %arg7[%c0_18, %c0_19] : memref<3x128xf32, #tpu.memory_space<vmem>>, vector<3x128xf32>
    tpu.vector_store %arg7[%c0_18, %c0_19], %47 {strides = array<i32>} : memref<3x128xf32, #tpu.memory_space<vmem>>, vector<3x128xf32>,
    %c0_i32_20 = arith.constant 0 : i32
    %49 = arith.cmpi eq, %arg1, %c0_i32_20 : i32
    %50 = arith.extui %49 : i1 to i32
    %c0_i32_21 = arith.constant 0 : i32
    %51 = arith.cmpi ne, %50, %c0_i32_21 : i32
    scf.if %51 {
      %c0_22 = arith.constant 0 : index
      %c0_23 = arith.constant 0 : index
      %52 = vector.load %arg6[%c0_22, %c0_23] : memref<3x128xf32, #tpu.memory_space<vmem>>, vector<3x128xf32>
      %cst_24 = arith.constant 0.00999999977 : f32
      %53 = vector.broadcast %cst_24 : f32 to vector<3x128xf32>
      %54 = arith.addf %52, %53 : vector<3x128xf32>
      %c0_25 = arith.constant 0 : index
      %c0_26 = arith.constant 0 : index
      %c0_27 = arith.constant 0 : index
      %55 = vector.load %arg4[%c0_25, %c0_26, %c0_27] : memref<1x3x128xf32, #tpu.memory_space<vmem>>, vector<1x3x128xf32>
      %56 = vector.shape_cast %55 : vector<1x3x128xf32> to vector<3x128xf32>
      %57 = vector.shape_cast %54 : vector<3x128xf32> to vector<1x3x128xf32>
      tpu.vector_store %arg4[%c0_25, %c0_26, %c0_27], %57 {strides = array<i32>} : memref<1x3x128xf32, #tpu.memory_space<vmem>>, vector<1x3x128xf32>,
      %c0_28 = arith.constant 0 : index
      %c0_29 = arith.constant 0 : index
      %58 = vector.load %arg7[%c0_28, %c0_29] : memref<3x128xf32, #tpu.memory_space<vmem>>, vector<3x128xf32>
      %cst_30 = arith.constant 0.00999999977 : f32
      %59 = vector.broadcast %cst_30 : f32 to vector<3x128xf32>
      %60 = arith.addf %58, %59 : vector<3x128xf32>
      %c0_31 = arith.constant 0 : index
      %c0_32 = arith.constant 0 : index
      %c0_33 = arith.constant 0 : index
      %61 = vector.load %arg5[%c0_31, %c0_32, %c0_33] : memref<1x3x128xf32, #tpu.memory_space<vmem>>, vector<1x3x128xf32>
      %62 = vector.shape_cast %61 : vector<1x3x128xf32> to vector<3x128xf32>
      %63 = vector.shape_cast %60 : vector<3x128xf32> to vector<1x3x128xf32>
      tpu.vector_store %arg5[%c0_31, %c0_32, %c0_33], %63 {strides = array<i32>} : memref<1x3x128xf32, #tpu.memory_space<vmem>>, vector<1x3x128xf32>,
    } else {
    }
    return
  }
  func.func @transform_0(%arg0: i32, %arg1: i32) -> (i32, i32, i32) {
    %c0_i32 = arith.constant 0 : i32
    %c0_i32_0 = arith.constant 0 : i32
    return %arg0, %c0_i32, %arg1 : i32, i32, i32
  }
  func.func @transform_1(%arg0: i32, %arg1: i32) -> (i32, i32, i32) {
    %c0_i32 = arith.constant 0 : i32
    %c0_i32_0 = arith.constant 0 : i32
    return %arg0, %c0_i32, %arg1 : i32, i32, i32
  }
  func.func @transform_2(%arg0: i32, %arg1: i32) -> (i32, i32, i32) {
    %c0_i32 = arith.constant 0 : i32
    %c0_i32_0 = arith.constant 0 : i32
    %c0_i32_1 = arith.constant 0 : i32
    return %arg0, %c0_i32, %c0_i32_0 : i32, i32, i32
  }
  func.func @transform_3(%arg0: i32, %arg1: i32) -> (i32, i32, i32) {
    %c0_i32 = arith.constant 0 : i32
    %c0_i32_0 = arith.constant 0 : i32
    %c0_i32_1 = arith.constant 0 : i32
    return %arg0, %c0_i32, %c0_i32_0 : i32, i32, i32
  }
}

</mosaic_0001>

<bundles_post_ra>
// kernel: tpu_custom_call.1
= control target key start
LH: loop header
LB: loop body
LE: loop exit
PB: predicated region body
PF: predicated region fallthrough
CT: control target
= control target key end

     0   :  { %9 = vsyncpa [#allocation5], 0  ;;  %s957_s0 = inlined_call_operand.hbm [shape: f32[2,4,256], index: 0, kind: input, shape index: {}]   ;;  %s958_s1 = inlined_call_operand.hbm [shape: s32[2,1,256], index: 1, kind: input, shape index: {}]   ;;  %s959_s2 = inlined_call_operand.vmem [shape: f32[2,3,128], index: 2, kind: output, shape index: {0}]   ;;  %s960_s3 = inlined_call_operand.vmem [shape: f32[2,3,128], index: 3, kind: output, shape index: {1}]  }
   0x1   :  { %11 = vsyncpa [#allocation5 + $0x1], 0 }
   0x2   :  { %12 = vsyncpa [#allocation7], 0 }
   0x3   :  { %14 = vsyncpa [#allocation7 + $0x1], 0  ;;  %s786_s12 = smov 0   ;;  %s788_s13 = smov 0  }
   0x4   :  { %s790_s14 = smov 0   ;;  %s792_s15 = smov 0  }
   0x5   :  { %s794_s16 = smov 0   ;;  %s796_s17 = smov 0  }
   0x6 LB: > { %s557_s18 = sadd.s32 4294967295, %s761_s17   ;;  %s32_s19 = sadd.s32 1, %s757_s16  ;;  %s761_s17 = sphi %s796_s17, %s20_s17   ;;  %s757_s16 = sphi %s794_s16, %s969_s16   ;;  %s753_s15 = sphi %s792_s15, %s968_s15   ;;  %s749_s14 = sphi %s790_s14, %s967_s14   ;;  %s745_s13 = sphi %s788_s13, %s966_s13   ;;  %s741_s12 = sphi %s786_s12, %s965_s12  }
   0x7   : > { %p34_p0 = scmp.ge.s32.totalorder %s32_s19, 2  ;;  %s41_s20 = sadd.s32 1, %s749_s14 }
   0x8   : > { %p48_p1 = scmp.ne.s32.totalorder %s749_s14, %s745_s13  ;;  %p49_p2 = scmp.eq.s32.totalorder %s761_s17, 0 }
   0x9   : > { %s971_s19 = smov (%p34_p0, %s32_s19), 0  ;;  %p54_p4 = scmp.ne.s32.totalorder %s745_s13, %s741_s12 }
   0xa   : > { %p822_p3 = por %p49_p2, %p48_p1  ;;  %s36_s22 = ssub.s32 %s757_s16, %s971_s19 }
   0xb   : > { %p55_p5 = scmp.eq.s32.totalorder %s557_s18, 0  ;;  %p39_p6 = scmp.eq.s32.totalorder %s36_s22, 0 }
   0xc   : > { %p593_p8 = scmp.lt.s32.totalorder %s761_s17, 2  ;;  %s838_s25 = sand.u32 1, %s749_s14  }
   0xd   : > { %p829_p7 = por %p55_p5, %p54_p4  ;;  %s580_s26 = sshll.u32 %s757_s16, 7 }
   0xe   : > { %s835_s24 = scalar_select %p39_p6, %s749_s14, %s41_s20  }
   0xf   : > { %s561_s27 = sshll.u32 %s838_s25, 3  ;;  %s170_s30 = scalar_lea.hbm %s957_s0, %s580_s26 }
  0x10   : > { %s162_s4 = scalar_lea.vmem [#allocation4], %s561_s27  ;;  %p847_p9 = pnand %p593_p8, %p822_p3 }
  0x11   : > { %s172_s5 = sshll.u32 %s162_s4, 4  ;;  %p567_p10 = scmp.ge.s32.totalorder %s761_s17, 1  ;;  %s173_s5 = int_to_ptr.vmem [resolvable:$true] %s172_s5 }
  0x12   : > { %p198_p11 = scmp.lt.s32.totalorder %s761_s17, 3  ;;  %s159_s7 = scalar_lea.sflag [#allocation5], %s838_s25 }
  0x13   : > { %p653_p12 = pneg %p847_p9  ;;  %s664_s8 = scalar_lea.vmem %s173_s5, 128 }
  0x14   : > { %p665_p13 = scmp.ne.s32.totalorder %s173_s5, %s664_s8  ;;  %s763_s9 = smov [#allocation4]  }
  0x15   : > { %s669_s10 = sshll.u32 %s763_s9, 4  ;;  %s670_s10 = int_to_ptr.vmem [resolvable:$false] %s669_s10 }
  0x16   : > { %p667_p0 = pnand %p665_p13, %p653_p12  ;;  %s671_s11 = scalar_lea.vmem %s670_s10, 256 }
  0x17   : > { %p672_p2 = scmp.lt.s32.totalorder %s173_s5, %s670_s10  ;;  %p673_p3 = scmp.lt.s32.totalorder %s671_s11, %s664_s8 }
  0x18   : > { %p668_p1 = pneg %p667_p0 }
  0x19   : > { %p674_p4 = por %p673_p3, %p672_p2 }
  0x1b   : > { %p675_p5 = pnand %p674_p4, %p668_p1 }
  0x1d   : > { %678 = shalt.err (!%p675_p5)
}
  0x1e   : > { %589 = dma.hbm_to_vmem [thread:$0]  (!%p847_p9), %s170_s30, 128, %s173_s5, %s159_s7  }
  0x1f   : > { %p865_p6 = pnand %p567_p10, %p198_p11  ;;  %s564_s18 = sshll.u32 %s838_s25, 1 }
  0x20   : > { %s581_s20 = sshll.u32 %s757_s16, 5  ;;  %s183_s27 = scalar_lea.vmem [#allocation6], %s564_s18 }
  0x21   : > { %s191_s26 = scalar_lea.hbm %s958_s1, %s581_s20  ;;  %s193_s28 = sshll.u32 %s183_s27, 4  ;;  %s194_s28 = int_to_ptr.vmem [resolvable:$true] %s193_s28 }
  0x22   : > { %s180_s29 = scalar_lea.sflag [#allocation7], %s838_s25  ;;  %s692_s4 = scalar_lea.vmem %s194_s28, 32 }
  0x23   : > { %p693_p8 = scmp.ne.s32.totalorder %s194_s28, %s692_s4  ;;  %s764_s30 = smov [#allocation6]  }
  0x24   : > { %s697_s5 = sshll.u32 %s764_s30, 4  ;;  %s698_s5 = int_to_ptr.vmem [resolvable:$false] %s697_s5 }
  0x25   : > { %p695_p13 = pnand %p693_p8, %p653_p12  ;;  %s699_s7 = scalar_lea.vmem %s698_s5, 64 }
  0x26   : > { %p700_p10 = scmp.lt.s32.totalorder %s194_s28, %s698_s5  ;;  %p701_p11 = scmp.lt.s32.totalorder %s699_s7, %s692_s4 }
  0x27   : > { %p696_p0 = pneg %p695_p13 }
  0x28   : > { %p702_p1 = por %p701_p11, %p700_p10 }
  0x2a   : > { %p703_p2 = pnand %p702_p1, %p696_p0 }
  0x2c   : > { %706 = shalt.err (!%p703_p2)
}
  0x2d   : > { %592 = dma.hbm_to_vmem [thread:$0]  (!%p847_p9), %s191_s26, 32, %s194_s28, %s180_s29  }
  0x2e   : > { %202 = sbr.rel (%p865_p6) target bundleno = 286 (0x11e), region = 28  ;;  %s204_s25 = sand.u32 (!%p865_p6), 1, %s745_s13  }
  0x2f   : > { %s568_s8 = sshll.u32 (!%p865_p6), %s204_s25, 3  ;;  %s205_s9 = scalar_lea.sflag (!%p865_p6), [#allocation5], %s204_s25 }
  0x30   : > { %s208_s10 = scalar_lea.vmem (!%p865_p6), [#allocation4], %s568_s8 }
  0x33   : > { %732 = dma.done.wait (%p829_p7), %s205_s9, 128  }
  0x34   : > { %734 = vsyncadd (%p829_p7), %s205_s9, 4294967168  ;;  %s569_s11 = sshll.u32 %s204_s25, 1  ;;  %s214_s18 = scalar_lea.sflag [#allocation7], %s204_s25 }
  0x35   : > { %s887_s20 = scalar_lea.vmem [#allocation6], %s569_s11 }
  0x36   : > { %736 = dma.done.wait (%p829_p7), %s214_s18, 32  }
  0x37   : > { %738 = vsyncadd (%p829_p7), %s214_s18, 4294967264  ;;  %v271_v0 = vlaneseq  ;;  %v765_v1 = vmov 0.0   ;;  %vm303_vm0 = vcmask 1040384   ;;  %vm306_vm1 = vcmask 1041408   ;;  %v348_v50 = vld [vmem:[%s887_s20] sm:$0x3] }
  0x38   : > { %262 = vst [vmem:[#allocation2] sm:$0x7] %v765_v1  ;;  %263 = vst [vmem:[#allocation3] sm:$0x7] %v765_v1  ;;  %vm309_vm2 = vcmask 1042432   ;;  %vm349_vm3 = vcmp.eq.s32.totalorder %v348_v50, 1 }
  0x39   : > { %v272_v2 = vshrl.u32 %v271_v0, 7  ;;  %v572_v5 = vld [vmem:[%s208_s10 + $0x1] ss:$4 sm:$0x3]  ;;  %vm352_vm4 = vcmp.eq.s32.totalorder %v348_v50, 2  ;;  %v575_v53 = vsel %vm349_vm3, 1.0, %v765_v1 }
  0x3a   : > { %v573_v6 = vld [vmem:[%s208_s10 + $0x2] ss:$4 sm:$0x3]  ;;  %v574_v7 = vld [vmem:[%s208_s10 + $0x3] ss:$4 sm:$0x3] }
  0x3b   : > { %v895_v3 = vsub.s32 0, %v272_v2  ;;  %v897_v4 = vsub.s32 1, %v272_v2  ;;  %v576_v54 = vsel %vm352_vm4, 1.0, %v765_v1  ;;  %vm355_vm5 = vcmp.eq.s32.totalorder %v348_v50, 3  ;;  %p250_p7 = scmp.lt.s32.totalorder %s753_s15, 1 }
  0x3c   : > { %v577_v55 = vsel %vm355_vm5, 1.0, %v765_v1 }
  0x3d   : > { %v274_v8 = vrot.slane %v572_v5, %v895_v3  ;;  %v278_v9 = vrot.slane %v572_v5, %v897_v4  ;;  %v285_v10 = vrot.slane %v573_v6, %v895_v3  ;;  %v289_v11 = vrot.slane %v573_v6, %v897_v4  ;;  %s973_s15 = smov (!%p250_p7, %s753_s15), 1 }
  0x3e   : > { %v296_v12 = vrot.slane %v574_v7, %v895_v3  ;;  %v300_v13 = vrot.slane %v574_v7, %v897_v4  ;;  %v362_v56 = vrot.slane %v575_v53, %v895_v3  ;;  %v373_v57 = vrot.slane %v576_v54, %v895_v3  ;;  %s570_s23 = sshll.u32 %s973_s15, 2 }
  0x3f   : > { %v304_v14 = vsel %vm303_vm0, %v274_v8, %v285_v10  ;;  %v305_v15 = vsel %vm303_vm0, %v278_v9, %v289_v11  ;;  %v366_v58 = vrot.slane %v575_v53, %v897_v4  ;;  %v377_v59 = vrot.slane %v576_v54, %v897_v4  ;;  %s253_s21 = scalar_lea.vmem %s959_s2, %s570_s23  ;;  %s257_s27 = scalar_lea.vmem %s960_s3, %s570_s23 }
  0x40   : > { %v307_v16 = vsel %vm306_vm1, %v304_v14, %v296_v12  ;;  %v308_v17 = vsel %vm306_vm1, %v305_v15, %v300_v13  ;;  %v384_v60 = vrot.slane %v577_v55, %v895_v3  ;;  %v388_v61 = vrot.slane %v577_v55, %v897_v4 }
  0x41   : > { %v310_v18 = vsel %vm309_vm2, %v307_v16, -inf  ;;  %v317_v19 = vsel %vm309_vm2, %v308_v17, -inf  ;;  %v391_v62 = vsel %vm303_vm0, %v362_v56, %v373_v57  ;;  %v392_v63 = vsel %vm303_vm0, %v366_v58, %v377_v59 }
  0x42   : > { %v311_v20 = vrot.slane %v310_v18, 4  ;;  %v318_v21 = vrot.slane %v317_v19, 4  ;;  %v393_v2 = vsel %vm306_vm1, %v391_v62, %v384_v60  ;;  %v394_v6 = vsel %vm306_vm1, %v392_v63, %v388_v61 }
  0x44   : > { %v312_v22 = vmax.f32 %v310_v18, %v311_v20  ;;  %v319_v23 = vmax.f32 %v317_v19, %v318_v21  ;;  %v405_v19 = vld [vmem:[#allocation3] sm:$0x7] }
  0x46   : > { %v313_v24 = vrot.slane %v312_v22, 2  ;;  %v320_v25 = vrot.slane %v319_v23, 2 }
  0x48   : > { %v314_v26 = vmax.f32 %v312_v22, %v313_v24  ;;  %v321_v27 = vmax.f32 %v319_v23, %v320_v25 }
  0x4a   : > { %v315_v28 = vrot.slane %v314_v26, 1  ;;  %v322_v29 = vrot.slane %v321_v27, 1 }
  0x4c   : > { %v316_v30 = vmax.f32 %v314_v26, %v315_v28  ;;  %v323_v31 = vmax.f32 %v321_v27, %v322_v29 }
  0x4e   : > { %v324_v32 = vsub.f32 %v307_v16, %v316_v30  ;;  %v325_v33 = vsub.f32 %v308_v17, %v323_v31  ;;  %v395_v16 = vld [vmem:[#allocation2] sm:$0x7] }
  0x50   : > { %v326_v34 = vmul.f32 1.442695, %v324_v32  ;;  %v328_v35 = vmul.f32 1.442695, %v325_v33 }
  0x52   : > { %643 = vpow2.f32 %v326_v34 }
  0x53   : > { %645 = vpow2.f32 %v328_v35 }
  0x5f   : > { %v644_v36 = vpop.eup %643 }
  0x60   : > { %v646_v37 = vpop.eup %645  ;;  %v330_v38 = vsel %vm309_vm2, %v644_v36, 0.0 }
  0x61   : > { %v331_v39 = vrot.slane %v330_v38, 4  ;;  %v337_v40 = vsel %vm309_vm2, %v646_v37, 0.0 }
  0x62   : > { %v338_v41 = vrot.slane %v337_v40, 4 }
  0x63   : > { %v332_v42 = vadd.f32 %v331_v39, %v330_v38 }
  0x64   : > { %v339_v43 = vadd.f32 %v338_v41, %v337_v40 }
  0x65   : > { %v333_v44 = vrot.slane %v332_v42, 2 }
  0x66   : > { %v340_v45 = vrot.slane %v339_v43, 2 }
  0x67   : > { %v334_v46 = vadd.f32 %v333_v44, %v332_v42 }
  0x68   : > { %v341_v47 = vadd.f32 %v340_v45, %v339_v43 }
  0x69   : > { %v335_v48 = vrot.slane %v334_v46, 1 }
  0x6a   : > { %v342_v49 = vrot.slane %v341_v47, 1 }
  0x6b   : > { %v336_v51 = vadd.f32 %v335_v48, %v334_v46 }
  0x6c   : > { %v343_v52 = vadd.f32 %v342_v49, %v341_v47 }
  0x6d   : > { %647 = vrcp.f32 %v336_v51 }
  0x6e   : > { %649 = vrcp.f32 %v343_v52 }
  0x7a   : > { %v648_v0 = vpop.eup %647 }
  0x7b   : > { %v650_v1 = vpop.eup %649  ;;  %v346_v5 = vmul.f32 %v648_v0, %v644_v36 }
  0x7c   : > { %v347_v7 = vmul.f32 %v650_v1, %v646_v37 }
  0x7d   : > { %v396_v8 = vmul.f32 %v393_v2, %v346_v5  ;;  %v406_v9 = vadd.f32 %v393_v2, %v346_v5 }
  0x7e   : > { %v397_v10 = vmul.f32 %v394_v6, %v347_v7  ;;  %v407_v3 = vadd.f32 %v394_v6, %v347_v7 }
  0x7f   : > { %v398_v4 = vsel %vm309_vm2, %v396_v8, 0.0  ;;  %v408_v11 = vsel %vm309_vm2, %v406_v9, 0.0 }
  0x80   : > { %v399_v12 = vsel %vm309_vm2, %v397_v10, 0.0  ;;  %v409_v13 = vsel %vm309_vm2, %v407_v3, 0.0 }
  0x81   : > { %v400_v14 = vadd.f32 %v399_v12, %v398_v4  ;;  %v410_v15 = vadd.f32 %v409_v13, %v408_v11 }
  0x83   : > { %401 = vadd.xlane.f32.xlu0 %v400_v14 }
  0x87   : > { %411 = vadd.xlane.f32.xlu0 %v410_v15 }
 0x10c   : > { %v402_v17 = vpop.xlane.xlu0 %401 }
 0x10d   : > { %v403_v18 = vadd.f32 %v402_v17, %v395_v16 }
 0x10f   : > { %404 = vst [vmem:[#allocation2] sm:$0x7] %v403_v18 }
 0x110   : > { %v412_v20 = vpop.xlane.xlu0 %411 }
 0x111   : > { %v413_v21 = vadd.f32 %v412_v20, %v405_v19 }
 0x113   : > { %414 = vst [vmem:[#allocation3] sm:$0x7] %v413_v21 }
 0x116   : > { %v418_v22 = vld [vmem:[#allocation2] sm:$0x7] }
 0x117   : > { %v419_v23 = vadd.f32 0.01, %v418_v22 }
 0x119   : > { %420 = vst [vmem:[%s253_s21] sm:$0x7] %v419_v23 }
 0x11a   : > { %v421_v24 = vld [vmem:[#allocation3] sm:$0x7] }
 0x11b   : > { %v422_v25 = vadd.f32 0.01, %v421_v24 }
 0x11d   : > { %423 = vst [vmem:[%s257_s27] sm:$0x7] %v422_v25 }
 0x11e PF: > { %s20_s17 = sadd.s32 1, %s761_s17   ;;  %s965_s12 = smov %s745_s13 }
 0x11f   : > { %p17_p9 = scmp.ge.s32.totalorder %s20_s17, 4   ;;  %s966_s13 = smov %s749_s14 }
 0x120   : > { %s967_s14 = smov %s835_s24  ;;  %s968_s15 = smov %s757_s16 }
 0x121   : > { %s969_s16 = smov %s971_s19  ;;  %19 = sbr.rel (!%p17_p9) target bundleno = 6 (0x6), region = 104 }
 0x126   :  { %457 = vsyncpa [#allocation5], 1 }
 0x127   :  { %459 = vsyncpa [#allocation5 + $0x1], 1 }
 0x128   :  { %460 = vsyncpa [#allocation7], 1 }
 0x129   :  { %462 = vsyncpa [#allocation7 + $0x1], 1 }

</bundles_post_ra>
